<compile_context>
chip_gen: v7x
topology: tpu7x:2x2x1
jax: 0.10.0
libtpu: 0.0.40
codegen_flags: <defaults>
</compile_context>

<pallas_src>
import jax
import jax.numpy as jnp
from jax.experimental import pallas as pl
from jax.experimental.pallas import tpu as pltpu

_LANES = 128
_SUBLANES = 8
_MAX_TILE_ROWS = 4096    # f32: 2 MiB/block; 2 inputs x 2 buffers = 8 MiB VMEM
_NUM_CORE_SLICES = 2     # leading "parallel" axis (2 TCs on v7x, serial otherwise)


def _make_focal_kernel(rows, tile_rows, ninner, need_mask):
    """Build the kernel with static tiling parameters baked in via closure."""

    def kernel(pred_ref, gt_ref, loss_out, npos_out, loss_acc, npos_acc):
        c = pl.program_id(0)
        i = pl.program_id(1)

        # Zero the resident VMEM accumulators at the start of every slice.
        @pl.when(i == 0)
        def _():
            loss_acc[...] = jnp.zeros_like(loss_acc)
            npos_acc[...] = jnp.zeros_like(npos_acc)

        pred = pred_ref[...].astype(jnp.float32)
        gt = gt_ref[...].astype(jnp.float32)

        pos = gt == 1.0
        pos_f = pos.astype(jnp.float32)

        one_m_pred = 1.0 - pred
        one_m_gt = 1.0 - gt
        t2 = one_m_gt * one_m_gt
        neg_w = t2 * t2                                   # (1 - gt)^4, two muls

        # pos / neg are mutually exclusive -> one log per element (single EUP op).
        log_term = jnp.log(jnp.where(pos, pred, one_m_pred))
        weight = jnp.where(pos, one_m_pred * one_m_pred, pred * pred * neg_w)
        contrib = log_term * weight                       # pos_loss + neg_loss

        if need_mask:
            # Ragged last block and/or clamped duplicate block: zero rows past
            # the valid row count (block padding holds unspecified data).
            start = (c * ninner + i) * tile_rows
            row_ids = jax.lax.broadcasted_iota(jnp.int32, (tile_rows, _LANES), 0)
            valid = (start + row_ids) < rows
            contrib = jnp.where(valid, contrib, 0.0)
            pos_f = jnp.where(valid, pos_f, 0.0)

        # Partial reduce along sublane groups only (pure VPU adds); the final
        # cross-lane reduce happens in the wrapper over the tiny outputs.
        loss_acc[...] += jnp.sum(contrib.reshape(-1, _SUBLANES, _LANES), axis=0)
        npos_acc[...] += jnp.sum(pos_f.reshape(-1, _SUBLANES, _LANES), axis=0)

        @pl.when(i == pl.num_programs(1) - 1)
        def _():
            loss_out[0] = loss_acc[...]
            npos_out[0] = npos_acc[...]

    return kernel


def focal_loss(pred, gt, *, max_tile_rows=_MAX_TILE_ROWS):
    """Pallas equivalent of FocalLoss().forward(pred, gt) for NCHW inputs."""
    assert pred.shape == gt.shape, "pred and gt must have identical shapes"

    # TPU has no f64 path; keep native sub-32-bit dtypes (bf16 -> half the HBM traffic).
    if pred.dtype.itemsize > 4:
        pred = pred.astype(jnp.float32)
    if gt.dtype.itemsize > 4:
        gt = gt.astype(jnp.float32)

    total = pred.size
    # Sublane multiple for the narrowest (possibly packed) input dtype.
    packing = max(1, 4 // min(pred.dtype.itemsize, gt.dtype.itemsize))
    sub_mult = _SUBLANES * packing

    # Pad only up to one (sub_mult, 128) tile; padded zeros are exactly neutral
    # (pred=0 -> log(1-0)=0, weight=0; gt=0 -> not a positive).
    chunk = sub_mult * _LANES
    padded_total = -(-total // chunk) * chunk
    pad = padded_total - total

    pred_flat = pred.reshape(-1)
    gt_flat = gt.reshape(-1)
    if pad:
        pred_flat = jnp.pad(pred_flat, (0, pad))
        gt_flat = jnp.pad(gt_flat, (0, pad))

    rows = padded_total // _LANES
    pred2d = pred_flat.reshape(rows, _LANES)
    gt2d = gt_flat.reshape(rows, _LANES)

    max_tile_rows = max(sub_mult, (max_tile_rows // sub_mult) * sub_mult)
    tile_rows = min(max_tile_rows, rows)
    nblocks = -(-rows // tile_rows)
    nouter = _NUM_CORE_SLICES if nblocks >= _NUM_CORE_SLICES else 1
    ninner = -(-nblocks // nouter)
    need_clamp = nouter * ninner > nblocks
    need_mask = (rows % tile_rows != 0) or need_clamp

    if need_clamp:
        last_block = nblocks - 1

        def in_index_map(c, i):
            return (jnp.minimum(c * ninner + i, last_block), 0)
    else:
        def in_index_map(c, i):
            return (c * ninner + i, 0)

    out_shapes = (
        jax.ShapeDtypeStruct((nouter, _SUBLANES, _LANES), jnp.float32),  # loss partials
        jax.ShapeDtypeStruct((nouter, _SUBLANES, _LANES), jnp.float32),  # num_pos partials
    )
    out_specs = (
        pl.BlockSpec((1, _SUBLANES, _LANES), lambda c, i: (c, 0, 0)),
        pl.BlockSpec((1, _SUBLANES, _LANES), lambda c, i: (c, 0, 0)),
    )

    cost = pl.CostEstimate(
        flops=14 * int(padded_total),
        transcendentals=int(padded_total),
        bytes_accessed=int(padded_total)
        * (pred2d.dtype.itemsize + gt2d.dtype.itemsize),
    )

    kernel = _make_focal_kernel(rows, tile_rows, ninner, need_mask)

    loss_parts, npos_parts = pl.pallas_call(
        kernel,
        out_shape=out_shapes,
        grid_spec=pltpu.PrefetchScalarGridSpec(
            num_scalar_prefetch=0,
            grid=(nouter, ninner),
            in_specs=[
                pl.BlockSpec((tile_rows, _LANES), in_index_map),
                pl.BlockSpec((tile_rows, _LANES), in_index_map),
            ],
            out_specs=out_specs,
            scratch_shapes=[
                pltpu.VMEM((_SUBLANES, _LANES), jnp.float32),  # loss partials
                pltpu.VMEM((_SUBLANES, _LANES), jnp.float32),  # num_pos partials
            ],
        ),
        compiler_params=pltpu.CompilerParams(
            dimension_semantics=("parallel", "arbitrary")),
        cost_estimate=cost,
    )(pred2d, gt2d)

    loss_sum = jnp.sum(loss_parts)
    num_pos = jnp.sum(npos_parts)
    # When num_pos == 0 the positive term is identically 0, so
    # -(pos+neg)/max(num_pos, 1) == -neg, matching the PyTorch branch.
    return -loss_sum / jnp.maximum(num_pos, 1.0)


def _focal_loss_ref(pred, gt):
    """Pure-JAX reference mirroring the PyTorch _neg_loss exactly."""
    pred = pred.astype(jnp.float32)
    gt = gt.astype(jnp.float32)
    pos_inds = (gt == 1.0).astype(jnp.float32)
    neg_inds = (gt < 1.0).astype(jnp.float32)
    neg_weights = (1.0 - gt) ** 4
    pos_loss = jnp.log(pred) * (1.0 - pred) ** 2 * pos_inds
    neg_loss = jnp.log(1.0 - pred) * pred ** 2 * neg_weights * neg_inds
    num_pos = pos_inds.sum()
    pos_loss = pos_loss.sum()
    neg_loss = neg_loss.sum()
    safe_den = jnp.where(num_pos == 0.0, 1.0, num_pos)
    return jnp.where(num_pos == 0.0, -neg_loss, -(pos_loss + neg_loss) / safe_den)


def _make_inputs(key, shape, peak_prob, lo=1e-4, hi=None):
    hi = 1.0 - lo if hi is None else hi
    k_pred, k_gt, k_peak = jax.random.split(key, 3)
    pred = jax.random.uniform(k_pred, shape, minval=lo, maxval=hi)
    soft = jax.random.uniform(k_gt, shape, minval=0.0, maxval=0.95)
    if peak_prob > 0.0:
        peaks = jax.random.uniform(k_peak, shape) < peak_prob
        gt = jnp.where(peaks, 1.0, soft)
    else:
        gt = soft
    return pred, gt


def _check(name, pred, gt, **kwargs):
    loss = jax.block_until_ready(focal_loss(pred, gt, **kwargs))
    ref = jax.block_until_ready(_focal_loss_ref(pred, gt))
    assert jnp.isfinite(loss), f"{name}: loss is not finite"
    assert jnp.allclose(loss, ref, rtol=1e-4, atol=1e-4), (name, loss, ref)


if __name__ == "__main__":
    key = jax.random.PRNGKey(0)
    k1, k2, k3, k4 = jax.random.split(key, 4)

    # Main case: NCHW matching the PyTorch conv layout (single-block path, no pad).
    pred, gt = _make_inputs(k1, (2, 4, 16, 16), peak_prob=0.02)
    _check("base", pred, gt)

    # Multi-block grid with odd block count: exercises the two-slice parallel
    # split, the index clamp, and the row mask (forced small tile).
    pred2, gt2 = _make_inputs(k2, (2, 4, 96, 96), peak_prob=0.01)
    _check("multiblock", pred2, gt2, max_tile_rows=64)

    # num_pos == 0 branch (no exact-1 peaks), odd flat size -> small-pad path.
    pred3, gt3 = _make_inputs(k3, (2, 3, 13, 17), peak_prob=0.0)
    _check("no_pos", pred3, gt3)

    # bf16 inputs (native dtype kept on the wire; packed sublane rounding).
    pred4, gt4 = _make_inputs(k4, (2, 4, 16, 16), peak_prob=0.02, lo=0.05, hi=0.95)
    _check("bf16", pred4.astype(jnp.bfloat16), gt4.astype(jnp.bfloat16))

    print("KERNEL_OK")
</pallas_src>

<mosaic_0001>
module attributes {stable_mosaic.version = 11 : i64} {
  func.func @kernel(%arg0: i32, %arg1: i32, %arg2: memref<16x128xf32, #tpu.memory_space<vmem>>, %arg3: memref<16x128xf32, #tpu.memory_space<vmem>>, %arg4: memref<1x8x128xf32, #tpu.memory_space<vmem>>, %arg5: memref<1x8x128xf32, #tpu.memory_space<vmem>>, %arg6: memref<8x128xf32, #tpu.memory_space<vmem>>, %arg7: memref<8x128xf32, #tpu.memory_space<vmem>>) attributes {dimension_semantics = [#tpu.dimension_semantics<parallel>, #tpu.dimension_semantics<arbitrary>], iteration_bounds = array<i64: 1, 1>, scalar_prefetch = 0 : i64, scratch_operands = 2 : i64, tpu.core_type = #tpu.core_type<tc>, window_params = [{transform_indices = @transform_0, window_bounds = array<i64: 16, 128>}, {transform_indices = @transform_1, window_bounds = array<i64: 16, 128>}, {transform_indices = @transform_2, window_bounds = array<i64: 1, 8, 128>}, {transform_indices = @transform_3, window_bounds = array<i64: 1, 8, 128>}]} {
    %c0_i32 = arith.constant 0 : i32
    %0 = arith.cmpi eq, %arg1, %c0_i32 : i32
    %1 = arith.extui %0 : i1 to i32
    %c0_i32_0 = arith.constant 0 : i32
    %2 = arith.cmpi ne, %1, %c0_i32_0 : i32
    scf.if %2 {
      %cst_18 = arith.constant 0.000000e+00 : f32
      %35 = vector.broadcast %cst_18 : f32 to vector<8x128xf32>
      %c0_19 = arith.constant 0 : index
      %c0_20 = arith.constant 0 : index
      %36 = vector.load %arg6[%c0_19, %c0_20] : memref<8x128xf32, #tpu.memory_space<vmem>>, vector<8x128xf32>
      tpu.vector_store %arg6[%c0_19, %c0_20], %35 {strides = array<i32>} : memref<8x128xf32, #tpu.memory_space<vmem>>, vector<8x128xf32>,
      %cst_21 = arith.constant 0.000000e+00 : f32
      %37 = vector.broadcast %cst_21 : f32 to vector<8x128xf32>
      %c0_22 = arith.constant 0 : index
      %c0_23 = arith.constant 0 : index
      %38 = vector.load %arg7[%c0_22, %c0_23] : memref<8x128xf32, #tpu.memory_space<vmem>>, vector<8x128xf32>
      tpu.vector_store %arg7[%c0_22, %c0_23], %37 {strides = array<i32>} : memref<8x128xf32, #tpu.memory_space<vmem>>, vector<8x128xf32>,
    } else {
    }
    %c0 = arith.constant 0 : index
    %c0_1 = arith.constant 0 : index
    %3 = vector.load %arg2[%c0, %c0_1] : memref<16x128xf32, #tpu.memory_space<vmem>>, vector<16x128xf32>
    %c0_2 = arith.constant 0 : index
    %c0_3 = arith.constant 0 : index
    %4 = vector.load %arg3[%c0_2, %c0_3] : memref<16x128xf32, #tpu.memory_space<vmem>>, vector<16x128xf32>
    %cst = arith.constant 1.000000e+00 : f32
    %5 = vector.broadcast %cst : f32 to vector<16x128xf32>
    %6 = arith.cmpf oeq, %4, %5 : vector<16x128xf32>
    %7 = arith.extui %6 : vector<16x128xi1> to vector<16x128xi32>
    %8 = arith.sitofp %7 : vector<16x128xi32> to vector<16x128xf32>
    %cst_4 = arith.constant 1.000000e+00 : f32
    %9 = vector.broadcast %cst_4 : f32 to vector<16x128xf32>
    %10 = arith.subf %9, %3 : vector<16x128xf32>
    %cst_5 = arith.constant 1.000000e+00 : f32
    %11 = vector.broadcast %cst_5 : f32 to vector<16x128xf32>
    %12 = arith.subf %11, %4 : vector<16x128xf32>
    %13 = arith.mulf %12, %12 : vector<16x128xf32>
    %14 = arith.mulf %13, %13 : vector<16x128xf32>
    %15 = arith.select %6, %3, %10 : vector<16x128xi1>, vector<16x128xf32>
    %16 = math.log %15 : vector<16x128xf32>
    %17 = arith.mulf %10, %10 : vector<16x128xf32>
    %18 = arith.mulf %3, %3 : vector<16x128xf32>
    %19 = arith.mulf %18, %14 : vector<16x128xf32>
    %20 = arith.select %6, %17, %19 : vector<16x128xi1>, vector<16x128xf32>
    %21 = arith.mulf %16, %20 : vector<16x128xf32>
    %c0_6 = arith.constant 0 : index
    %c0_7 = arith.constant 0 : index
    %22 = vector.load %arg6[%c0_6, %c0_7] : memref<8x128xf32, #tpu.memory_space<vmem>>, vector<8x128xf32>
    %23 = vector.shape_cast %21 : vector<16x128xf32> to vector<2x8x128xf32>
    %cst_8 = arith.constant dense<0.000000e+00> : vector<8x128xf32>
    %24 = vector.multi_reduction <add>, %23, %cst_8 [0] : vector<2x8x128xf32> to vector<8x128xf32>
    %25 = arith.addf %22, %24 : vector<8x128xf32>
    %c0_9 = arith.constant 0 : index
    %c0_10 = arith.constant 0 : index
    %26 = vector.load %arg6[%c0_9, %c0_10] : memref<8x128xf32, #tpu.memory_space<vmem>>, vector<8x128xf32>
    tpu.vector_store %arg6[%c0_9, %c0_10], %25 {strides = array<i32>} : memref<8x128xf32, #tpu.memory_space<vmem>>, vector<8x128xf32>,
    %c0_11 = arith.constant 0 : index
    %c0_12 = arith.constant 0 : index
    %27 = vector.load %arg7[%c0_11, %c0_12] : memref<8x128xf32, #tpu.memory_space<vmem>>, vector<8x128xf32>
    %28 = vector.shape_cast %8 : vector<16x128xf32> to vector<2x8x128xf32>
    %cst_13 = arith.constant dense<0.000000e+00> : vector<8x128xf32>
    %29 = vector.multi_reduction <add>, %28, %cst_13 [0] : vector<2x8x128xf32> to vector<8x128xf32>
    %30 = arith.addf %27, %29 : vector<8x128xf32>
    %c0_14 = arith.constant 0 : index
    %c0_15 = arith.constant 0 : index
    %31 = vector.load %arg7[%c0_14, %c0_15] : memref<8x128xf32, #tpu.memory_space<vmem>>, vector<8x128xf32>
    tpu.vector_store %arg7[%c0_14, %c0_15], %30 {strides = array<i32>} : memref<8x128xf32, #tpu.memory_space<vmem>>, vector<8x128xf32>,
    %c0_i32_16 = arith.constant 0 : i32
    %32 = arith.cmpi eq, %arg1, %c0_i32_16 : i32
    %33 = arith.extui %32 : i1 to i32
    %c0_i32_17 = arith.constant 0 : i32
    %34 = arith.cmpi ne, %33, %c0_i32_17 : i32
    scf.if %34 {
      %c0_18 = arith.constant 0 : index
      %c0_19 = arith.constant 0 : index
      %35 = vector.load %arg6[%c0_18, %c0_19] : memref<8x128xf32, #tpu.memory_space<vmem>>, vector<8x128xf32>
      %c0_20 = arith.constant 0 : index
      %c0_21 = arith.constant 0 : index
      %c0_22 = arith.constant 0 : index
      %36 = vector.load %arg4[%c0_20, %c0_21, %c0_22] : memref<1x8x128xf32, #tpu.memory_space<vmem>>, vector<1x8x128xf32>
      %37 = vector.shape_cast %36 : vector<1x8x128xf32> to vector<8x128xf32>
      %38 = vector.shape_cast %35 : vector<8x128xf32> to vector<1x8x128xf32>
      tpu.vector_store %arg4[%c0_20, %c0_21, %c0_22], %38 {strides = array<i32>} : memref<1x8x128xf32, #tpu.memory_space<vmem>>, vector<1x8x128xf32>,
      %c0_23 = arith.constant 0 : index
      %c0_24 = arith.constant 0 : index
      %39 = vector.load %arg7[%c0_23, %c0_24] : memref<8x128xf32, #tpu.memory_space<vmem>>, vector<8x128xf32>
      %c0_25 = arith.constant 0 : index
      %c0_26 = arith.constant 0 : index
      %c0_27 = arith.constant 0 : index
      %40 = vector.load %arg5[%c0_25, %c0_26, %c0_27] : memref<1x8x128xf32, #tpu.memory_space<vmem>>, vector<1x8x128xf32>
      %41 = vector.shape_cast %40 : vector<1x8x128xf32> to vector<8x128xf32>
      %42 = vector.shape_cast %39 : vector<8x128xf32> to vector<1x8x128xf32>
      tpu.vector_store %arg5[%c0_25, %c0_26, %c0_27], %42 {strides = array<i32>} : memref<1x8x128xf32, #tpu.memory_space<vmem>>, vector<1x8x128xf32>,
    } else {
    }
    return
  }
  func.func @transform_0(%arg0: i32, %arg1: i32) -> (i32, i32) {
    %c1_i32 = arith.constant 1 : i32
    %0 = arith.muli %arg0, %c1_i32 : i32
    %1 = arith.addi %0, %arg1 : i32
    %c0_i32 = arith.constant 0 : i32
    %c0_i32_0 = arith.constant 0 : i32
    return %1, %c0_i32 : i32, i32
  }
  func.func @transform_1(%arg0: i32, %arg1: i32) -> (i32, i32) {
    %c1_i32 = arith.constant 1 : i32
    %0 = arith.muli %arg0, %c1_i32 : i32
    %1 = arith.addi %0, %arg1 : i32
    %c0_i32 = arith.constant 0 : i32
    %c0_i32_0 = arith.constant 0 : i32
    return %1, %c0_i32 : i32, i32
  }
  func.func @transform_2(%arg0: i32, %arg1: i32) -> (i32, i32, i32) {
    %c0_i32 = arith.constant 0 : i32
    %c0_i32_0 = arith.constant 0 : i32
    %c0_i32_1 = arith.constant 0 : i32
    return %arg0, %c0_i32, %c0_i32_0 : i32, i32, i32
  }
  func.func @transform_3(%arg0: i32, %arg1: i32) -> (i32, i32, i32) {
    %c0_i32 = arith.constant 0 : i32
    %c0_i32_0 = arith.constant 0 : i32
    %c0_i32_1 = arith.constant 0 : i32
    return %arg0, %c0_i32, %c0_i32_0 : i32, i32, i32
  }
}

</mosaic_0001>

<bundles_post_ra>
// kernel: tpu_custom_call.1
= control target key start
LH: loop header
LB: loop body
LE: loop exit
PB: predicated region body
PF: predicated region fallthrough
CT: control target
= control target key end

     0   :  { %9 = vsyncpa [#allocation5], 0  ;;  %s330_s0 = inlined_call_operand.hbm [shape: f32[16,128], index: 0, kind: input, shape index: {}]   ;;  %s331_s1 = inlined_call_operand.hbm [shape: f32[16,128], index: 1, kind: input, shape index: {}]   ;;  %s332_s2 = inlined_call_operand.hbm [shape: f32[1,8,128], index: 2, kind: output, shape index: {0}]   ;;  %s333_s3 = inlined_call_operand.hbm [shape: f32[1,8,128], index: 3, kind: output, shape index: {1}]  }
   0x1   :  { %10 = vsyncpa [#allocation8], 0 }
   0x2   :  { %11 = vsyncpa [#allocation6], 0 }
   0x3   :  { %12 = vsyncpa [#allocation11], 0  ;;  %s249_s12 = smov [#allocation4]   ;;  %s153_s16 = scalar_lea.hbm %s330_s0, 256 }
   0x4   :  { %s22_s13 = sshll.u32 %s249_s12, 4  ;;  %p154_p0 = scmp.ne.s32.totalorder %s330_s0, %s153_s16  ;;  %s23_s13 = int_to_ptr.vmem [resolvable:$true] %s22_s13 }
   0x5   :  { %p157_p1 = scmp.lt.u32.totalorder %s153_s16, %s330_s0 }
   0x7   :  { %p159_p2 = pnand %p157_p1, %p154_p0 }
   0x9   :  { %162 = shalt.err (!%p159_p2)
}
   0xa   :  { %s163_s21 = scalar_lea.vmem %s23_s13, 256  ;;  %p168_p4 = scmp.lt.s32.totalorder %s23_s13, %s23_s13 }
   0xb   :  { %p164_p3 = scmp.ne.s32.totalorder %s23_s13, %s163_s21  ;;  %p169_p5 = scmp.lt.s32.totalorder %s163_s21, %s163_s21 }
   0xd   :  { %p170_p6 = por %p169_p5, %p168_p4 }
   0xf   :  { %p171_p7 = pnand %p170_p6, %p164_p3 }
  0x11   :  { %174 = shalt.err (!%p171_p7)
}
  0x12   :  { %s250_s22 = smov 128   ;;  %s251_s23 = smov 8  }
  0x13   :  { %28 = dma.hbm_to_vmem [thread:$0]  %s330_s0, 256, %s23_s13, [#allocation5], %s250_s22, %s250_s22, %s251_s23  }
  0x14   :  { %s252_s26 = smov [#allocation7]   ;;  %s175_s30 = scalar_lea.hbm %s331_s1, 256 }
  0x15   :  { %s38_s27 = sshll.u32 %s252_s26, 4  ;;  %p176_p8 = scmp.ne.s32.totalorder %s331_s1, %s175_s30  ;;  %s39_s27 = int_to_ptr.vmem [resolvable:$true] %s38_s27 }
  0x16   :  { %p179_p9 = scmp.lt.u32.totalorder %s175_s30, %s331_s1 }
  0x18   :  { %p181_p10 = pnand %p179_p9, %p176_p8 }
  0x1a   :  { %184 = shalt.err (!%p181_p10)
}
  0x1b   :  { %s185_s8 = scalar_lea.vmem %s39_s27, 256  ;;  %p190_p12 = scmp.lt.s32.totalorder %s39_s27, %s39_s27 }
  0x1c   :  { %p186_p11 = scmp.ne.s32.totalorder %s39_s27, %s185_s8  ;;  %p191_p13 = scmp.lt.s32.totalorder %s185_s8, %s185_s8 }
  0x1e   :  { %p192_p0 = por %p191_p13, %p190_p12 }
  0x20   :  { %p193_p1 = pnand %p192_p0, %p186_p11 }
  0x22   :  { %196 = shalt.err (!%p193_p1)
}
  0x23   :  { %44 = dma.hbm_to_vmem [thread:$0]  %s331_s1, 256, %s39_s27, [#allocation8], %s250_s22, %s250_s22, %s251_s23  }
  0x24   :  { %241 = dma.done.wait [#allocation5], 256  }
  0x25   :  { %242 = vsyncadd [#allocation5], 4294967040 }
  0x26   :  { %243 = dma.done.wait [#allocation8], 256  }
  0x27   :  { %244 = vsyncadd [#allocation8], 4294967040  ;;  %v61_v0 = vld [vmem:[#allocation4] sm:$0xff]  ;;  %v62_v1 = vld [vmem:[#allocation4 + $0x8] sm:$0xff]  ;;  %s253_s1 = smov [#allocation10]   ;;  %v254_v12 = vmov 0.0  }
  0x28   :  { %v63_v2 = vld [vmem:[#allocation7] sm:$0xff]  ;;  %v64_v3 = vld [vmem:[#allocation7 + $0x8] sm:$0xff]  ;;  %v71_v4 = vsub.f32 1.0, %v61_v0  ;;  %v72_v5 = vsub.f32 1.0, %v62_v1  ;;  %s126_s10 = sshll.u32 %s253_s1, 4  ;;  %v87_v16 = vmul.f32 %v61_v0, %v61_v0  ;;  %v88_v19 = vmul.f32 %v62_v1, %v62_v1  ;;  %s127_s10 = int_to_ptr.vmem [resolvable:$true] %s126_s10 }
  0x29   :  { %vm65_vm0 = vcmp.eq.f32.partialorder %v63_v2, 1.0  ;;  %v73_v6 = vsub.f32 1.0, %v63_v2  ;;  %vm66_vm1 = vcmp.eq.f32.partialorder %v64_v3, 1.0  ;;  %v74_v7 = vsub.f32 1.0, %v64_v3  ;;  %s197_s11 = scalar_lea.vmem %s127_s10, 128  ;;  %p202_p3 = scmp.lt.s32.totalorder %s127_s10, %s127_s10 }
  0x2a   :  { %v79_v9 = vsel %vm65_vm0, %v61_v0, %v71_v4  ;;  %v80_v10 = vsel %vm66_vm1, %v62_v1, %v72_v5  ;;  %v140_v13 = vsel %vm65_vm0, 1.0, %v254_v12  ;;  %v141_v14 = vsel %vm66_vm1, 1.0, %v254_v12  ;;  %p198_p2 = scmp.ne.s32.totalorder %s127_s10, %s197_s11  ;;  %p203_p4 = scmp.lt.s32.totalorder %s197_s11, %s197_s11 }
  0x2b   :  { %v75_v8 = vmul.f32 %v73_v6, %v73_v6  ;;  %v76_v11 = vmul.f32 %v74_v7, %v74_v7  ;;  %149 = vlog2.f32 %v79_v9  ;;  %v100_v17 = vadd.f32 %v141_v14, %v140_v13 }
  0x2c   :  { %151 = vlog2.f32 %v80_v10  ;;  %p204_p5 = por %p203_p4, %p202_p3 }
  0x2d   :  { %v77_v15 = vmul.f32 %v75_v8, %v75_v8  ;;  %v78_v18 = vmul.f32 %v76_v11, %v76_v11  ;;  %109 = vst [vmem:[#allocation10] sm:$0xff] %v100_v17 }
  0x2e   :  { %p205_p6 = pnand %p204_p5, %p198_p2 }
  0x30   :  { %208 = shalt.err (!%p205_p6)
}
  0x31   :  { %s209_s14 = scalar_lea.hbm %s333_s3, 128 }
  0x32   :  { %p210_p7 = scmp.ne.s32.totalorder %s333_s3, %s209_s14  ;;  %p213_p8 = scmp.lt.u32.totalorder %s209_s14, %s333_s3 }
  0x34   :  { %p215_p9 = pnand %p213_p8, %p210_p7 }
  0x36   :  { %218 = shalt.err (!%p215_p9)
}
  0x37   :  { %129 = dma.vmem_to_hbm [thread:$0]  %s127_s10, 128, %s333_s3, [#allocation11]   ;;  %v85_v20 = vmul.f32 %v71_v4, %v71_v4  ;;  %v89_v21 = vmul.f32 %v87_v16, %v77_v15  ;;  %v86_v22 = vmul.f32 %v72_v5, %v72_v5  ;;  %v90_v23 = vmul.f32 %v88_v19, %v78_v18  ;;  %v150_v24 = vpop.eup %149 }
  0x38   :  { %v152_v26 = vpop.eup %151  ;;  %v82_v27 = vmul.f32 0.6931472, %v150_v24  ;;  %s255_s21 = smov [#allocation9]  }
  0x39   :  { %v91_v25 = vsel %vm65_vm0, %v85_v20, %v89_v21  ;;  %v92_v28 = vsel %vm66_vm1, %v86_v22, %v90_v23  ;;  %v84_v29 = vmul.f32 0.6931472, %v152_v26  ;;  %s116_s22 = sshll.u32 %s255_s21, 4  ;;  %s117_s22 = int_to_ptr.vmem [resolvable:$true] %s116_s22 }
  0x3a   :  { %v93_v30 = vmul.f32 %v91_v25, %v82_v27  ;;  %s219_s3 = scalar_lea.vmem %s117_s22, 128  ;;  %p224_p11 = scmp.lt.s32.totalorder %s117_s22, %s117_s22 }
  0x3b   :  { %v94_v31 = vmul.f32 %v92_v28, %v84_v29  ;;  %p220_p10 = scmp.ne.s32.totalorder %s117_s22, %s219_s3  ;;  %p225_p12 = scmp.lt.s32.totalorder %s219_s3, %s219_s3 }
  0x3d   :  { %v96_v32 = vadd.f32 %v94_v31, %v93_v30  ;;  %p226_p13 = por %p225_p12, %p224_p11 }
  0x3f   :  { %107 = vst [vmem:[#allocation9] sm:$0xff] %v96_v32  ;;  %p227_p0 = pnand %p226_p13, %p220_p10 }
  0x41   :  { %230 = shalt.err (!%p227_p0)
}
  0x42   :  { %s231_s25 = scalar_lea.hbm %s332_s2, 128 }
  0x43   :  { %p232_p1 = scmp.ne.s32.totalorder %s332_s2, %s231_s25  ;;  %p235_p2 = scmp.lt.u32.totalorder %s231_s25, %s332_s2 }
  0x45   :  { %p237_p3 = pnand %p235_p2, %p232_p1 }
  0x47   :  { %240 = shalt.err (!%p237_p3)
}
  0x48   :  { %119 = dma.vmem_to_hbm [thread:$0]  %s117_s22, 128, %s332_s2, [#allocation6]  }
  0x49   :  { %245 = dma.done.wait [#allocation6], 128  }
  0x4a   :  { %246 = vsyncadd [#allocation6], 4294967168 }
  0x4b   :  { %247 = dma.done.wait [#allocation11], 128  }
  0x4c   :  { %248 = vsyncadd [#allocation11], 4294967168 }
  0x4d   :  { %136 = vsyncpa [#allocation5], 1 }
  0x4e   :  { %137 = vsyncpa [#allocation8], 1 }
  0x4f   :  { %138 = vsyncpa [#allocation6], 1 }
  0x50   :  { %139 = vsyncpa [#allocation11], 1 }

</bundles_post_ra>
